<compile_context>
chip_gen: v6e
topology: v6e:2x2x1
jax: 0.10.0
libtpu: 0.0.40
codegen_flags: <defaults>
</compile_context>

<pallas_src>
import jax
import jax.numpy as jnp
from jax import lax
from jax.experimental import pallas as pl
from jax.experimental.pallas import tpu as pltpu

LANE = 128        # vreg lane width
SUB = 8           # vreg sublane count
CHUNK_ROWS = 512  # rows per inner-loop chunk (f32: 256 KiB per operand chunk)


def _round_up(x, m):
    return ((x + m - 1) // m) * m


def _as_2d(x):
    if x.ndim == 2:
        return x
    if x.ndim <= 1:
        return x.reshape(1, -1)
    return x.reshape(x.shape[0], -1)


def _num_tensorcores():
    """Best-effort TensorCore count per chip for 'parallel' (megacore) sharding.

    1 on v5e/v6e (single TC per chip); 2 on v4/v5p (megacore) and v7x.
    Falls back to 1, which is always correct (a 2nd core would simply idle).
    """
    try:
        kind = jax.devices()[0].device_kind.lower()
    except Exception:
        return 1
    if any(tag in kind for tag in ("v4", "v5p", "v7", "7x")):
        return 2
    return 1


def make_vae_loss_kernel(coef_kl, coef_classify, *, n_true, rows, block_rows,
                         chunk_rows, nblk_per_core):
    coef_kl = float(coef_kl)
    coef_classify = float(coef_classify)
    inv_n = 1.0 / float(n_true)
    nchunks = block_rows // chunk_rows
    has_kl = coef_kl != 0.0
    has_bce = coef_classify != 0.0

    def vae_loss_kernel(out_ref, in_ref, mean_ref, logvar_ref,
                        logits_ref, labels_ref, partial_ref, acc_ref):
        c = pl.program_id(0)                 # TensorCore split index
        i = pl.program_id(1)                 # row-block index (reduction axis)
        blk = c * nblk_per_core + i          # UNclamped global block index
        base_row = blk * block_rows

        # --- init accumulator at the start of this core's reduction --------
        @pl.when(i == 0)
        def _():
            acc_ref[...] = jnp.zeros_like(acc_ref)

        # --- hot loop: squared error, lane-parallel accumulation -----------
        # Stream the (block_rows, 128) tile in row chunks; keep the running
        # (8, 128) partial in vregs (fori_loop carry), add to acc_ref once.
        def accumulate(masked):
            def body(j, acc):
                off = j * chunk_rows
                if not isinstance(off, int):
                    off = pl.multiple_of(off, chunk_rows)
                o = out_ref[pl.ds(off, chunk_rows), :].astype(jnp.float32)
                x = in_ref[pl.ds(off, chunk_rows), :].astype(jnp.float32)
                d = o - x
                sq = d * d
                if masked:
                    # Zero rows past the true slab extent (partial tail block,
                    # or a clamped phantom block of the 2nd core split).
                    # jnp.where so OOB NaN/Inf garbage cannot propagate.
                    rid = (base_row + off +
                           lax.broadcasted_iota(jnp.int32, (chunk_rows, 1), 0))
                    sq = jnp.where(rid < rows, sq, 0.0)
                return acc + sq.reshape(chunk_rows // SUB, SUB, LANE).sum(axis=0)

            zero = jnp.zeros((SUB, LANE), jnp.float32)
            if nchunks == 1:
                acc_ref[...] += body(0, zero)
            else:
                acc_ref[...] += lax.fori_loop(0, nchunks, body, zero)

        is_full = base_row + block_rows <= rows

        @pl.when(is_full)
        def _():
            accumulate(masked=False)          # interior blocks: no mask cost

        @pl.when(jnp.logical_not(is_full))
        def _():
            accumulate(masked=True)           # tail / phantom blocks only

        # --- epilogue: scale by 1/N, fold KL/BCE once (core 0 only) --------
        # NOTE: the out-spec block index is constant over i, so partial_ref
        # stays resident across the reduction axis and is written back only
        # when the block index changes / at grid end -> writing it only at
        # the last i is correct.
        @pl.when(i == nblk_per_core - 1)
        def _():
            partial_ref[...] = acc_ref[...] * jnp.float32(inv_n)
            if has_kl or has_bce:
                @pl.when(c == 0)
                def _():
                    extra = jnp.float32(0.0)
                    if has_kl:
                        mu = mean_ref[...].astype(jnp.float32)
                        lv = logvar_ref[...].astype(jnp.float32)
                        kl = -0.5 * jnp.sum(1.0 + lv - mu * mu - jnp.exp(lv))
                        extra = extra + jnp.float32(coef_kl) * kl
                    if has_bce:
                        x = logits_ref[...].astype(jnp.float32)
                        y = labels_ref[...].astype(jnp.float32)
                        bce_e = (jnp.maximum(x, 0.0) - x * y
                                 + jnp.log1p(jnp.exp(-jnp.abs(x))))
                        bce = jnp.sum(bce_e) * jnp.float32(1.0 / bce_e.size)
                        extra = extra + jnp.float32(coef_classify) * bce
                    r = lax.broadcasted_iota(jnp.int32, (SUB, LANE), 0)
                    cl = lax.broadcasted_iota(jnp.int32, (SUB, LANE), 1)
                    sel = jnp.logical_and(r == 0, cl == 0)
                    partial_ref[...] = partial_ref[...] + jnp.where(
                        sel, extra, jnp.float32(0.0))

    return vae_loss_kernel


def vae_loss(outputs, inputs, mean, log_var, logits, labels,
             coef_kl=1e-6, coef_classify=0.0,
             block_rows=None, n_core_splits=None):
    """Pallas VAELoss forward.

    outputs/inputs: any shape (e.g. NCHW), any float dtype.  Pass bf16 when
    numerically acceptable (the kernel upcasts and accumulates in f32): the
    MSE stream is HBM-bandwidth bound, so halving the bytes ~halves kernel
    time.  Do NOT cast in this wrapper — that would add a full extra HBM pass.
    mean/log_var: (B, latent).  logits/labels: (B, n_cls).
    Returns a scalar f32 loss.
    """
    assert outputs.shape == inputs.shape
    n = int(outputs.size)
    itemsize = int(jnp.dtype(outputs.dtype).itemsize)

    out_flat = outputs.reshape(-1)      # contiguous reshape: bitcast, no copy
    in_flat = inputs.reshape(-1)
    rem = n % LANE
    if rem:
        # Sub-128 ragged tail: pad BOTH tensors with the same zeros so the
        # diff is 0 there; the MSE still divides by the true element count.
        # TODO(synk): this pad is a full-tensor copy; only hit when
        # numel % 128 != 0 (block/grid granularity no longer forces it).
        pad = LANE - rem
        out_flat = jnp.pad(out_flat, (0, pad))
        in_flat = jnp.pad(in_flat, (0, pad))
    rows = out_flat.size // LANE
    out2d = out_flat.reshape(rows, LANE)
    in2d = in_flat.reshape(rows, LANE)

    # ---- tiling: ~4 MiB streaming tile per input, chunked inner loop ------
    if block_rows is None:
        block_rows = max(SUB, (4 * 1024 * 1024) // (LANE * itemsize))
    block_rows = max(SUB, min(int(block_rows), _round_up(rows, SUB)))
    block_rows = _round_up(block_rows, SUB)
    if block_rows >= CHUNK_ROWS:
        chunk_rows = CHUNK_ROWS
        block_rows = _round_up(block_rows, chunk_rows)
    else:
        chunk_rows = block_rows

    nblk_total = -(-rows // block_rows)               # non-dividing grid OK
    if n_core_splits is None:
        n_core_splits = _num_tensorcores()
    n_core_splits = max(1, min(int(n_core_splits), nblk_total))
    nblk_per_core = -(-nblk_total // n_core_splits)

    mean2 = _as_2d(mean)
    logvar2 = _as_2d(log_var)
    logits2 = _as_2d(logits)
    labels2 = _as_2d(labels)

    kernel = make_vae_loss_kernel(
        coef_kl, coef_classify, n_true=n, rows=rows, block_rows=block_rows,
        chunk_rows=chunk_rows, nblk_per_core=nblk_per_core)

    last_blk = nblk_total - 1

    def stream_map(c, i):
        # Clamp a possible phantom block of the last core split; the kernel
        # masks it to a zero contribution.
        return (jnp.minimum(c * nblk_per_core + i, last_blk), 0)

    rec_spec = pl.BlockSpec((block_rows, LANE), stream_map)

    bytes_accessed = int(
        2 * rows * LANE * itemsize
        + mean2.size * jnp.dtype(mean2.dtype).itemsize
        + logvar2.size * jnp.dtype(logvar2.dtype).itemsize
        + logits2.size * jnp.dtype(logits2.dtype).itemsize
        + labels2.size * jnp.dtype(labels2.dtype).itemsize
        + n_core_splits * SUB * LANE * 4)
    cost = pl.CostEstimate(
        flops=int(3 * rows * LANE + 6 * mean2.size + 8 * logits2.size),
        transcendentals=int(mean2.size + 2 * logits2.size),
        bytes_accessed=bytes_accessed)

    partials = pl.pallas_call(
        kernel,
        out_shape=jax.ShapeDtypeStruct((n_core_splits * SUB, LANE), jnp.float32),
        grid_spec=pltpu.PrefetchScalarGridSpec(
            num_scalar_prefetch=0,
            grid=(n_core_splits, nblk_per_core),
            in_specs=[
                rec_spec,                                          # outputs slab
                rec_spec,                                          # inputs  slab
                pl.BlockSpec(mean2.shape, lambda c, i: (0, 0)),    # mean
                pl.BlockSpec(logvar2.shape, lambda c, i: (0, 0)),  # log_var
                pl.BlockSpec(logits2.shape, lambda c, i: (0, 0)),  # logits
                pl.BlockSpec(labels2.shape, lambda c, i: (0, 0)),  # labels
            ],
            out_specs=pl.BlockSpec((SUB, LANE), lambda c, i: (c, 0)),
            scratch_shapes=[pltpu.VMEM((SUB, LANE), jnp.float32)],
        ),
        compiler_params=pltpu.CompilerParams(
            dimension_semantics=("parallel", "arbitrary"),
            vmem_limit_bytes=32 * 1024 * 1024),
        cost_estimate=cost,
    )(out2d, in2d, mean2, logvar2, logits2, labels2)

    # Combine the per-core lane-parallel partials into the final scalar.
    return jnp.sum(partials)


def vae_loss_ref(outputs, inputs, mean, log_var, logits, labels,
                 coef_kl=1e-6, coef_classify=0.0):
    """Pure-JAX reference for correctness checks."""
    mse = jnp.mean((outputs - inputs) ** 2)
    kl = -0.5 * jnp.sum(1.0 + log_var - mean ** 2 - jnp.exp(log_var))
    x, y = logits, labels
    bce = jnp.mean(jnp.maximum(x, 0.0) - x * y + jnp.log1p(jnp.exp(-jnp.abs(x))))
    return mse + coef_kl * kl + coef_classify * bce


if __name__ == "__main__":
    key = jax.random.PRNGKey(0)
    ks = jax.random.split(key, 12)

    def run_case(shape, latent, ncls, coef_kl, coef_classify, keys, **kw):
        outputs = jax.random.normal(keys[0], shape, dtype=jnp.float32)
        inputs = jax.random.normal(keys[1], shape, dtype=jnp.float32)
        B = shape[0]
        mean = jax.random.normal(keys[2], (B, latent), dtype=jnp.float32) * 0.1
        log_var = jax.random.normal(keys[3], (B, latent), dtype=jnp.float32) * 0.1
        logits = jax.random.normal(keys[4], (B, ncls), dtype=jnp.float32)
        labels = (jax.random.uniform(keys[5], (B, ncls)) > 0.5).astype(jnp.float32)

        got = vae_loss(outputs, inputs, mean, log_var, logits, labels,
                       coef_kl=coef_kl, coef_classify=coef_classify, **kw)
        got = jax.block_until_ready(got)
        want = vae_loss_ref(outputs, inputs, mean, log_var, logits, labels,
                            coef_kl=coef_kl, coef_classify=coef_classify)
        assert jnp.allclose(got, want, rtol=1e-5, atol=1e-5), (shape, kw, got, want)

    # 1) PyTorch defaults (coef_classify == 0 -> BCE branch statically skipped).
    run_case((2, 4, 16, 16), 32, 8, 1e-6, 0.0, ks[0:6])
    # 2) All three terms active (single full block, no pad, no mask).
    run_case((2, 4, 16, 16), 32, 8, 1e-3, 0.5, ks[0:6])
    # 3) Non-128-aligned element count -> minimal pad + masked tail block.
    run_case((3, 3, 10, 13), 16, 5, 1e-3, 0.5, ks[6:12])
    # 4) Force multi-block grid + 2-way core split (works on 1-TC chips too).
    run_case((2, 4, 16, 16), 32, 8, 1e-3, 0.5, ks[0:6],
             block_rows=8, n_core_splits=2)
    # 5) Odd block count with 2 splits -> exercises the clamped phantom block.
    run_case((3, 4, 16, 16), 32, 8, 1e-3, 0.5, ks[6:12],
             block_rows=8, n_core_splits=2)

    print("KERNEL_OK")
</pallas_src>

<mosaic_0001>
module attributes {stable_mosaic.version = 11 : i64} {
  func.func @vae_loss_kernel(%arg0: i32, %arg1: i32, %arg2: memref<16x128xf32, #tpu.memory_space<vmem>>, %arg3: memref<16x128xf32, #tpu.memory_space<vmem>>, %arg4: memref<2x32xf32, #tpu.memory_space<vmem>>, %arg5: memref<2x32xf32, #tpu.memory_space<vmem>>, %arg6: memref<2x8xf32, #tpu.memory_space<vmem>>, %arg7: memref<2x8xf32, #tpu.memory_space<vmem>>, %arg8: memref<8x128xf32, #tpu.memory_space<vmem>>, %arg9: memref<8x128xf32, #tpu.memory_space<vmem>>) attributes {dimension_semantics = [#tpu.dimension_semantics<parallel>, #tpu.dimension_semantics<arbitrary>], iteration_bounds = array<i64: 1, 1>, scalar_prefetch = 0 : i64, scratch_operands = 1 : i64, tpu.core_type = #tpu.core_type<tc>, window_params = [{transform_indices = @transform_0, window_bounds = array<i64: 16, 128>}, {transform_indices = @transform_1, window_bounds = array<i64: 16, 128>}, {pipeline_mode = #tpu.pipeline_mode<synchronous>, transform_indices = @transform_2, window_bounds = array<i64: 2, 32>}, {pipeline_mode = #tpu.pipeline_mode<synchronous>, transform_indices = @transform_3, window_bounds = array<i64: 2, 32>}, {pipeline_mode = #tpu.pipeline_mode<synchronous>, transform_indices = @transform_4, window_bounds = array<i64: 2, 8>}, {pipeline_mode = #tpu.pipeline_mode<synchronous>, transform_indices = @transform_5, window_bounds = array<i64: 2, 8>}, {transform_indices = @transform_6, window_bounds = array<i64: 8, 128>}]} {
    %c1_i32 = arith.constant 1 : i32
    %0 = arith.muli %arg0, %c1_i32 : i32
    %1 = arith.addi %0, %arg1 : i32
    %c16_i32 = arith.constant 16 : i32
    %2 = arith.muli %1, %c16_i32 : i32
    %c0_i32 = arith.constant 0 : i32
    %3 = arith.cmpi eq, %arg1, %c0_i32 : i32
    %4 = arith.extui %3 : i1 to i32
    %c0_i32_0 = arith.constant 0 : i32
    %5 = arith.cmpi ne, %4, %c0_i32_0 : i32
    scf.if %5 {
      %cst = arith.constant 0.000000e+00 : f32
      %16 = vector.broadcast %cst : f32 to vector<8x128xf32>
      %c0 = arith.constant 0 : index
      %c0_7 = arith.constant 0 : index
      %17 = vector.load %arg9[%c0, %c0_7] : memref<8x128xf32, #tpu.memory_space<vmem>>, vector<8x128xf32>
      tpu.vector_store %arg9[%c0, %c0_7], %16 {strides = array<i32>} : memref<8x128xf32, #tpu.memory_space<vmem>>, vector<8x128xf32>,
    } else {
    }
    %c16_i32_1 = arith.constant 16 : i32
    %6 = arith.addi %2, %c16_i32_1 : i32
    %c16_i32_2 = arith.constant 16 : i32
    %7 = arith.cmpi sle, %6, %c16_i32_2 : i32
    %8 = arith.extui %7 : i1 to i32
    %c0_i32_3 = arith.constant 0 : i32
    %9 = arith.cmpi ne, %8, %c0_i32_3 : i32
    scf.if %9 {
      %cst = arith.constant 0.000000e+00 : f32
      %16 = vector.broadcast %cst : f32 to vector<8x128xf32>
      %c0 = arith.constant 0 : index
      %c0_7 = arith.constant 0 : index
      %17 = vector.load %arg9[%c0, %c0_7] : memref<8x128xf32, #tpu.memory_space<vmem>>, vector<8x128xf32>
      %c0_8 = arith.constant 0 : index
      %c0_9 = arith.constant 0 : index
      %18 = vector.load %arg2[%c0_8, %c0_9] : memref<16x128xf32, #tpu.memory_space<vmem>>, vector<16x128xf32>
      %c0_10 = arith.constant 0 : index
      %c0_11 = arith.constant 0 : index
      %19 = vector.load %arg3[%c0_10, %c0_11] : memref<16x128xf32, #tpu.memory_space<vmem>>, vector<16x128xf32>
      %20 = arith.subf %18, %19 : vector<16x128xf32>
      %21 = arith.mulf %20, %20 : vector<16x128xf32>
      %22 = vector.shape_cast %21 : vector<16x128xf32> to vector<2x8x128xf32>
      %cst_12 = arith.constant dense<0.000000e+00> : vector<8x128xf32>
      %23 = vector.multi_reduction <add>, %22, %cst_12 [0] : vector<2x8x128xf32> to vector<8x128xf32>
      %24 = arith.addf %16, %23 : vector<8x128xf32>
      %25 = arith.addf %17, %24 : vector<8x128xf32>
      %c0_13 = arith.constant 0 : index
      %c0_14 = arith.constant 0 : index
      %26 = vector.load %arg9[%c0_13, %c0_14] : memref<8x128xf32, #tpu.memory_space<vmem>>, vector<8x128xf32>
      tpu.vector_store %arg9[%c0_13, %c0_14], %25 {strides = array<i32>} : memref<8x128xf32, #tpu.memory_space<vmem>>, vector<8x128xf32>,
    } else {
    }
    %true = arith.constant true
    %10 = arith.xori %7, %true : i1
    %11 = arith.extui %10 : i1 to i32
    %c0_i32_4 = arith.constant 0 : i32
    %12 = arith.cmpi ne, %11, %c0_i32_4 : i32
    scf.if %12 {
      %cst = arith.constant 0.000000e+00 : f32
      %16 = vector.broadcast %cst : f32 to vector<8x128xf32>
      %c0 = arith.constant 0 : index
      %c0_7 = arith.constant 0 : index
      %17 = vector.load %arg9[%c0, %c0_7] : memref<8x128xf32, #tpu.memory_space<vmem>>, vector<8x128xf32>
      %c0_8 = arith.constant 0 : index
      %c0_9 = arith.constant 0 : index
      %18 = vector.load %arg2[%c0_8, %c0_9] : memref<16x128xf32, #tpu.memory_space<vmem>>, vector<16x128xf32>
      %c0_10 = arith.constant 0 : index
      %c0_11 = arith.constant 0 : index
      %19 = vector.load %arg3[%c0_10, %c0_11] : memref<16x128xf32, #tpu.memory_space<vmem>>, vector<16x128xf32>
      %20 = arith.subf %18, %19 : vector<16x128xf32>
      %21 = arith.mulf %20, %20 : vector<16x128xf32>
      %c0_i32_12 = arith.constant 0 : i32
      %22 = arith.addi %2, %c0_i32_12 : i32
      %23 = tpu.iota {dimensions = array<i32: 0>} : vector<16x1xi32>
      %24 = vector.broadcast %22 : i32 to vector<16x1xi32>
      %25 = arith.addi %24, %23 : vector<16x1xi32>
      %c16_i32_13 = arith.constant 16 : i32
      %26 = vector.broadcast %c16_i32_13 : i32 to vector<16x1xi32>
      %27 = arith.cmpi slt, %25, %26 : vector<16x1xi32>
      %cst_14 = arith.constant 0.000000e+00 : f32
      %28 = vector.shape_cast %27 : vector<16x1xi1> to vector<16x1xi1>
      %29 = vector.broadcast %28 : vector<16x1xi1> to vector<16x128xi1>
      %30 = vector.broadcast %cst_14 : f32 to vector<16x128xf32>
      %31 = arith.select %29, %21, %30 : vector<16x128xi1>, vector<16x128xf32>
      %32 = vector.shape_cast %31 : vector<16x128xf32> to vector<2x8x128xf32>
      %cst_15 = arith.constant dense<0.000000e+00> : vector<8x128xf32>
      %33 = vector.multi_reduction <add>, %32, %cst_15 [0] : vector<2x8x128xf32> to vector<8x128xf32>
      %34 = arith.addf %16, %33 : vector<8x128xf32>
      %35 = arith.addf %17, %34 : vector<8x128xf32>
      %c0_16 = arith.constant 0 : index
      %c0_17 = arith.constant 0 : index
      %36 = vector.load %arg9[%c0_16, %c0_17] : memref<8x128xf32, #tpu.memory_space<vmem>>, vector<8x128xf32>
      tpu.vector_store %arg9[%c0_16, %c0_17], %35 {strides = array<i32>} : memref<8x128xf32, #tpu.memory_space<vmem>>, vector<8x128xf32>,
    } else {
    }
    %c0_i32_5 = arith.constant 0 : i32
    %13 = arith.cmpi eq, %arg1, %c0_i32_5 : i32
    %14 = arith.extui %13 : i1 to i32
    %c0_i32_6 = arith.constant 0 : i32
    %15 = arith.cmpi ne, %14, %c0_i32_6 : i32
    scf.if %15 {
      %c0 = arith.constant 0 : index
      %c0_7 = arith.constant 0 : index
      %16 = vector.load %arg9[%c0, %c0_7] : memref<8x128xf32, #tpu.memory_space<vmem>>, vector<8x128xf32>
      %cst = arith.constant 4.8828125E-4 : f32
      %17 = vector.broadcast %cst : f32 to vector<8x128xf32>
      %18 = arith.mulf %16, %17 : vector<8x128xf32>
      %c0_8 = arith.constant 0 : index
      %c0_9 = arith.constant 0 : index
      %19 = vector.load %arg8[%c0_8, %c0_9] : memref<8x128xf32, #tpu.memory_space<vmem>>, vector<8x128xf32>
      tpu.vector_store %arg8[%c0_8, %c0_9], %18 {strides = array<i32>} : memref<8x128xf32, #tpu.memory_space<vmem>>, vector<8x128xf32>,
      %c0_i32_10 = arith.constant 0 : i32
      %20 = arith.cmpi eq, %arg0, %c0_i32_10 : i32
      %21 = arith.extui %20 : i1 to i32
      %c0_i32_11 = arith.constant 0 : i32
      %22 = arith.cmpi ne, %21, %c0_i32_11 : i32
      scf.if %22 {
        %c0_12 = arith.constant 0 : index
        %c0_13 = arith.constant 0 : index
        %23 = vector.load %arg4[%c0_12, %c0_13] : memref<2x32xf32, #tpu.memory_space<vmem>>, vector<2x32xf32>
        %c0_14 = arith.constant 0 : index
        %c0_15 = arith.constant 0 : index
        %24 = vector.load %arg5[%c0_14, %c0_15] : memref<2x32xf32, #tpu.memory_space<vmem>>, vector<2x32xf32>
        %cst_16 = arith.constant 1.000000e+00 : f32
        %25 = vector.broadcast %cst_16 : f32 to vector<2x32xf32>
        %26 = arith.addf %25, %24 : vector<2x32xf32>
        %27 = arith.mulf %23, %23 : vector<2x32xf32>
        %28 = arith.subf %26, %27 : vector<2x32xf32>
        %29 = math.exp %24 : vector<2x32xf32>
        %30 = arith.subf %28, %29 : vector<2x32xf32>
        %31 = vector.shape_cast %30 : vector<2x32xf32> to vector<1x2x32xf32>
        %cst_17 = arith.constant dense<0.000000e+00> : vector<1xf32>
        %32 = vector.multi_reduction <add>, %31, %cst_17 [1, 2] : vector<1x2x32xf32> to vector<1xf32>
        %33 = vector.shape_cast %32 : vector<1xf32> to vector<1x1x1xf32>
        %34 = vector.extract %33[0, 0, 0] : f32 from vector<1x1x1xf32>
        %cst_18 = arith.constant -5.000000e-01 : f32
        %35 = arith.mulf %cst_18, %34 : f32
        %cst_19 = arith.constant 9.99999997E-7 : f32
        %36 = arith.mulf %cst_19, %35 : f32
        %cst_20 = arith.constant 0.000000e+00 : f32
        %37 = arith.addf %cst_20, %36 : f32
        %38 = tpu.iota {dimensions = array<i32: 0>} : vector<8x128xi32>
        %39 = tpu.iota {dimensions = array<i32: 1>} : vector<8x128xi32>
        %c0_i32_21 = arith.constant 0 : i32
        %40 = vector.broadcast %c0_i32_21 : i32 to vector<8x128xi32>
        %41 = arith.cmpi eq, %38, %40 : vector<8x128xi32>
        %c0_i32_22 = arith.constant 0 : i32
        %42 = vector.broadcast %c0_i32_22 : i32 to vector<8x128xi32>
        %43 = arith.cmpi eq, %39, %42 : vector<8x128xi32>
        %44 = arith.andi %41, %43 : vector<8x128xi1>
        %c0_23 = arith.constant 0 : index
        %c0_24 = arith.constant 0 : index
        %45 = vector.load %arg8[%c0_23, %c0_24] : memref<8x128xf32, #tpu.memory_space<vmem>>, vector<8x128xf32>
        %cst_25 = arith.constant 0.000000e+00 : f32
        %46 = vector.broadcast %37 : f32 to vector<8x128xf32>
        %47 = vector.broadcast %cst_25 : f32 to vector<8x128xf32>
        %48 = arith.select %44, %46, %47 : vector<8x128xi1>, vector<8x128xf32>
        %49 = arith.addf %45, %48 : vector<8x128xf32>
        %c0_26 = arith.constant 0 : index
        %c0_27 = arith.constant 0 : index
        %50 = vector.load %arg8[%c0_26, %c0_27] : memref<8x128xf32, #tpu.memory_space<vmem>>, vector<8x128xf32>
        tpu.vector_store %arg8[%c0_26, %c0_27], %49 {strides = array<i32>} : memref<8x128xf32, #tpu.memory_space<vmem>>, vector<8x128xf32>,
      } else {
      }
    } else {
    }
    return
  }
  func.func @transform_0(%arg0: i32, %arg1: i32) -> (i32, i32) {
    %c1_i32 = arith.constant 1 : i32
    %0 = arith.muli %arg0, %c1_i32 : i32
    %1 = arith.addi %0, %arg1 : i32
    %c0_i32 = arith.constant 0 : i32
    %2 = arith.minsi %1, %c0_i32 : i32
    %c0_i32_0 = arith.constant 0 : i32
    %c0_i32_1 = arith.constant 0 : i32
    return %2, %c0_i32_0 : i32, i32
  }
  func.func @transform_1(%arg0: i32, %arg1: i32) -> (i32, i32) {
    %c1_i32 = arith.constant 1 : i32
    %0 = arith.muli %arg0, %c1_i32 : i32
    %1 = arith.addi %0, %arg1 : i32
    %c0_i32 = arith.constant 0 : i32
    %2 = arith.minsi %1, %c0_i32 : i32
    %c0_i32_0 = arith.constant 0 : i32
    %c0_i32_1 = arith.constant 0 : i32
    return %2, %c0_i32_0 : i32, i32
  }
  func.func @transform_2(%arg0: i32, %arg1: i32) -> (i32, i32) {
    %c0_i32 = arith.constant 0 : i32
    %c0_i32_0 = arith.constant 0 : i32
    %c0_i32_1 = arith.constant 0 : i32
    return %c0_i32, %c0_i32_0 : i32, i32
  }
  func.func @transform_3(%arg0: i32, %arg1: i32) -> (i32, i32) {
    %c0_i32 = arith.constant 0 : i32
    %c0_i32_0 = arith.constant 0 : i32
    %c0_i32_1 = arith.constant 0 : i32
    return %c0_i32, %c0_i32_0 : i32, i32
  }
  func.func @transform_4(%arg0: i32, %arg1: i32) -> (i32, i32) {
    %c0_i32 = arith.constant 0 : i32
    %c0_i32_0 = arith.constant 0 : i32
    %c0_i32_1 = arith.constant 0 : i32
    return %c0_i32, %c0_i32_0 : i32, i32
  }
  func.func @transform_5(%arg0: i32, %arg1: i32) -> (i32, i32) {
    %c0_i32 = arith.constant 0 : i32
    %c0_i32_0 = arith.constant 0 : i32
    %c0_i32_1 = arith.constant 0 : i32
    return %c0_i32, %c0_i32_0 : i32, i32
  }
  func.func @transform_6(%arg0: i32, %arg1: i32) -> (i32, i32) {
    %c0_i32 = arith.constant 0 : i32
    %c0_i32_0 = arith.constant 0 : i32
    return %arg0, %c0_i32 : i32, i32
  }
}

</mosaic_0001>

<bundles_post_ra>
// kernel: tpu_custom_call.1
= control target key start
LH: loop header
LB: loop body
LE: loop exit
PB: predicated region body
PF: predicated region fallthrough
CT: control target
= control target key end

     0   :  { %11 = vsyncpa [#allocation4], 0  ;;  %s322_s0 = inlined_call_operand.hbm [shape: f32[16,128], index: 0, kind: input, shape index: {}]   ;;  %s323_s1 = inlined_call_operand.hbm [shape: f32[16,128], index: 1, kind: input, shape index: {}]   ;;  %s324_s2 = inlined_call_operand.vmem [shape: f32[2,32], index: 2, kind: input, shape index: {}]   ;;  %s325_s3 = inlined_call_operand.vmem [shape: f32[2,32], index: 3, kind: input, shape index: {}]   ;;  %s326_s4 = inlined_call_operand.vmem [shape: f32[2,8], index: 4, kind: input, shape index: {}]   ;;  %s327_s5 = inlined_call_operand.vmem [shape: f32[2,8], index: 5, kind: input, shape index: {}]   ;;  %s328_s6 = inlined_call_operand.hbm [shape: f32[8,128], index: 6, kind: output, shape index: {}]  }
   0x1   :  { %12 = vsyncpa [#allocation7], 0 }
   0x2   :  { %13 = vsyncpa [#allocation5], 0  ;;  %s267_s21 = smov [#allocation3]  }
   0x3   :  { %s25_s22 = sshll.u32 %s267_s21, 4  ;;  %s26_s22 = int_to_ptr.vmem [resolvable:$true] %s25_s22 }
   0x4   :  { %s209_s23 = scalar_lea.vmem %s26_s22, 256  ;;  %p214_p1 = scmp.lt.s32.totalorder %s26_s22, %s26_s22 }
   0x5   :  { %p210_p0 = scmp.ne.s32.totalorder %s26_s22, %s209_s23  ;;  %p215_p2 = scmp.lt.s32.totalorder %s209_s23, %s209_s23 }
   0x7   :  { %p216_p3 = por %p215_p2, %p214_p1 }
   0x9   :  { %p217_p4 = pnand %p216_p3, %p210_p0 }
   0xb   :  { %220 = shalt.err (!%p217_p4)
}
   0xc   :  { %s268_s4 = smov 128   ;;  %s269_s24 = smov 8  }
   0xd   :  { %31 = dma.hbm_to_vmem [thread:$0]  %s322_s0, 256, %s26_s22, [#allocation4], %s268_s4, %s268_s4, %s269_s24  }
   0xe   :  { %s270_s26 = smov [#allocation6]  }
   0xf   :  { %s43_s27 = sshll.u32 %s270_s26, 4  ;;  %s44_s27 = int_to_ptr.vmem [resolvable:$true] %s43_s27 }
  0x10   :  { %s229_s28 = scalar_lea.vmem %s44_s27, 256  ;;  %p234_p6 = scmp.lt.s32.totalorder %s44_s27, %s44_s27 }
  0x11   :  { %p230_p5 = scmp.ne.s32.totalorder %s44_s27, %s229_s28  ;;  %p235_p7 = scmp.lt.s32.totalorder %s229_s28, %s229_s28 }
  0x13   :  { %p236_p8 = por %p235_p7, %p234_p6 }
  0x15   :  { %p237_p9 = pnand %p236_p8, %p230_p5 }
  0x17   :  { %240 = shalt.err (!%p237_p9)
}
  0x18   :  { %49 = dma.hbm_to_vmem [thread:$0]  %s323_s1, 256, %s44_s27, [#allocation7], %s268_s4, %s268_s4, %s269_s24  }
  0x19   :  { %261 = dma.done.wait [#allocation4], 256  }
  0x1a   :  { %262 = vsyncadd [#allocation4], 4294967040 }
  0x1b   :  { %263 = dma.done.wait [#allocation7], 256  }
  0x1c   :  { %264 = vsyncadd [#allocation7], 4294967040  ;;  %v139_v0 = vld [vmem:[%s325_s3] sm:$0x3]  ;;  %vm146_vm0 = vcmask 254976   ;;  %v86_v17 = vld [vmem:[#allocation3 + $0x8] sm:$0xff]  ;;  %v160_v22 = vlaneseq }
  0x1d   :  { %v143_v1 = vmul.f32 1.442695, %v139_v0  ;;  %v138_v2 = vld [vmem:[%s324_s2] sm:$0x3]  ;;  %v140_v3 = vadd.f32 1.0, %v139_v0  ;;  %v87_v18 = vld [vmem:[#allocation6] sm:$0xff] }
  0x1e   :  { %v141_v4 = vmul.f32 %v138_v2, %v138_v2  ;;  %v85_v16 = vld [vmem:[#allocation3] sm:$0xff]  ;;  %v88_v19 = vld [vmem:[#allocation6 + $0x8] sm:$0xff]  ;;  %v161_v25 = vshrl.u32 %v160_v22, 7  ;;  %v163_v26 = vand.u32 127, %v160_v22  ;;  %s271_s10 = smov [#allocation8]  }
  0x1f   :  { %199 = vpow2.f32 %v143_v1  ;;  %v89_v20 = vsub.f32 %v85_v16, %v87_v18  ;;  %v90_v21 = vsub.f32 %v86_v17, %v88_v19  ;;  %s178_s11 = sshll.u32 %s271_s10, 4  ;;  %s179_s11 = int_to_ptr.vmem [resolvable:$true] %s178_s11 }
  0x20   :  { %v142_v5 = vsub.f32 %v140_v3, %v141_v4  ;;  %vm164_vm1 = vcmp.eq.s32.totalorder %v161_v25, 0  ;;  %vm165_vm2 = vcmp.eq.s32.totalorder %v163_v26, 0  ;;  %s241_s12 = scalar_lea.vmem %s179_s11, 128  ;;  %p246_p11 = scmp.lt.s32.totalorder %s179_s11, %s179_s11 }
  0x21   :  { %v91_v23 = vmul.f32 %v89_v20, %v89_v20  ;;  %v92_v24 = vmul.f32 %v90_v21, %v90_v21  ;;  %vm166_vm3 = vmand %vm164_vm1, %vm165_vm2  ;;  %p242_p10 = scmp.ne.s32.totalorder %s179_s11, %s241_s12  ;;  %p247_p12 = scmp.lt.s32.totalorder %s241_s12, %s241_s12 }
  0x23   :  { %v93_v27 = vadd.f32 %v92_v24, %v91_v23  ;;  %p248_p13 = por %p247_p12, %p246_p11 }
  0x25   :  { %v132_v28 = vmul.f32 0.00048828125, %v93_v27  ;;  %p249_p0 = pnand %p248_p13, %p242_p10 }
  0x2c   :  { %v200_v6 = vpop.eup %199 }
  0x2d   :  { %v145_v7 = vsub.f32 %v142_v5, %v200_v6 }
  0x2f   :  { %v147_v8 = vsel %vm146_vm0, %v145_v7, 0.0 }
  0x30   :  { %148 = vadd.xlane.f32.xlu0 %v147_v8 }
  0xb9   :  { %v149_v9 = vpop.xlane.xlu0 %148 }
  0xba   :  { %v150_v10 = vrot.slane %v149_v9, 4 }
  0xbc   :  { %v151_v11 = vadd.f32 %v150_v10, %v149_v9 }
  0xbe   :  { %v152_v12 = vrot.slane %v151_v11, 2 }
  0xc0   :  { %v153_v13 = vadd.f32 %v152_v12, %v151_v11 }
  0xc2   :  { %v154_v14 = vrot.slane %v153_v13, 1 }
  0xc4   :  { %v155_v15 = vadd.f32 %v154_v14, %v153_v13 }
  0xc6   :  { %192 = vpush %v155_v15 }
  0xf7   :  { %s193_s1 = spop %192 }
  0xf8   :  { %s157_s2 = smul.f32 -0.5, %s193_s1 }
  0xfa   :  { %s158_s3 = smul.f32 1e-06, %s157_s2 }
  0xfc   :  { %v168_v29 = vstv %s158_s3 }
  0xfd   :  { %v169_v30 = vsel %vm166_vm3, %v168_v29, 0.0 }
  0xfe   :  { %v170_v31 = vadd.f32 %v169_v30, %v132_v28 }
 0x100   :  { %171 = vst [vmem:[#allocation8] sm:$0xff] %v170_v31 }
 0x101   :  { %252 = shalt.err (!%p249_p0)
}
 0x102   :  { %181 = dma.vmem_to_hbm [thread:$0]  %s179_s11, 128, %s328_s6, [#allocation5]  }
 0x103   :  { %265 = dma.done.wait [#allocation5], 128  }
 0x104   :  { %266 = vsyncadd [#allocation5], 4294967168 }
 0x105   :  { %185 = vsyncpa [#allocation4], 1 }
 0x106   :  { %186 = vsyncpa [#allocation7], 1 }
 0x107   :  { %187 = vsyncpa [#allocation5], 1 }

</bundles_post_ra>
